<compile_context>
chip_gen: v7x
topology: tpu7x:2x2x1
jax: 0.10.0
libtpu: 0.0.40
codegen_flags: <defaults>
</compile_context>

<pallas_src>
import jax
import jax.numpy as jnp
from jax.experimental import pallas as pl
from jax.experimental.pallas import tpu as pltpu

POS_WEIGHT = 50.0
LANES = 128
MAX_BLOCK_ROWS = 1024   # 1024 x 128 f32 = 512 KiB per input block
NUM_CORES = 2           # leading "parallel" grid axis -> both TCs on v7x


def _make_kernel(n, block_rows, per_core_blocks, needs_index_mask):
    def kernel(yhat_ref, y_ref, sum_out_ref, cnt_out_ref, acc_ref, cnt_ref):
        c = pl.program_id(0)   # core (parallel) axis
        i = pl.program_id(1)   # reduction (arbitrary) axis

        @pl.when(i == 0)
        def _init():
            acc_ref[...] = jnp.zeros_like(acc_ref)
            cnt_ref[...] = jnp.zeros_like(cnt_ref)

        # Cast in-kernel: inputs stream HBM->VMEM in their upstream dtype.
        x = yhat_ref[...].astype(jnp.float32)
        t = y_ref[...].astype(jnp.float32)

        mask = t > -0.5
        if needs_index_mask:
            # Mask out padded tail elements and the over-range (clamped
            # duplicate) blocks of the second core.
            logical_block = c * per_core_blocks + i
            base = logical_block * (block_rows * LANES)
            row = jax.lax.broadcasted_iota(jnp.int32, (block_rows, LANES), 0)
            lane = jax.lax.broadcasted_iota(jnp.int32, (block_rows, LANES), 1)
            flat_idx = base + row * LANES + lane
            mask = jnp.logical_and(mask, flat_idx < n)

        # Numerically-stable BCE-with-logits (PyTorch pos_weight formulation):
        #   loss = (1-t)*x + (1 + (pw-1)*t) * (max(-x,0) + log1p(exp(-|x|)))
        lw = 1.0 + (POS_WEIGHT - 1.0) * t
        softplus = jnp.maximum(-x, 0.0) + jnp.log1p(jnp.exp(-jnp.abs(x)))
        loss = (1.0 - t) * x + lw * softplus

        # vreg-shaped accumulators: elementwise VPU adds on the carried path.
        acc_ref[...] += jnp.where(mask, loss, 0.0)
        cnt_ref[...] += mask.astype(jnp.float32)

        @pl.when(i == pl.num_programs(1) - 1)
        def _finalize():
            # Single cross-lane reduce per core; broadcast scalar across lanes.
            sum_out_ref[...] = jnp.full(
                sum_out_ref.shape, jnp.sum(acc_ref[...]), jnp.float32)
            cnt_out_ref[...] = jnp.full(
                cnt_out_ref.shape, jnp.sum(cnt_ref[...]), jnp.float32)

    return kernel


def custom_bce_with_logits_loss(y_hat, y):
    """Flatten, tile to (rows, 128), run the Pallas masked-BCE reduction."""
    n = int(y_hat.size)
    assert n > 0, "empty input"

    yhat_flat = jnp.ravel(y_hat)
    y_flat = jnp.ravel(y)

    # Minimal pad to a multiple of 128 only when strictly required (a no-op
    # for typical dense shapes); padded elements are masked in-kernel.
    padded = ((n + LANES - 1) // LANES) * LANES
    if padded != n:
        yhat_flat = jnp.pad(yhat_flat, (0, padded - n))
        y_flat = jnp.pad(y_flat, (0, padded - n))

    rows = padded // LANES
    yhat2d = yhat_flat.reshape(rows, LANES)
    y2d = y_flat.reshape(rows, LANES)

    block_rows = min(MAX_BLOCK_ROWS, rows)
    total_blocks = (rows + block_rows - 1) // block_rows
    per_core = (total_blocks + NUM_CORES - 1) // NUM_CORES
    covered = NUM_CORES * per_core * block_rows * LANES
    needs_index_mask = covered != n

    def in_map(c, i):
        # Clamp so over-range logical blocks re-read the last real block;
        # their contribution is zeroed by the in-kernel flat-index mask.
        return (jnp.minimum(c * per_core + i, total_blocks - 1), 0)

    kernel = _make_kernel(n, block_rows, per_core, needs_index_mask)

    sums, cnts = pl.pallas_call(
        kernel,
        out_shape=(
            jax.ShapeDtypeStruct((NUM_CORES, 1, LANES), jnp.float32),
            jax.ShapeDtypeStruct((NUM_CORES, 1, LANES), jnp.float32),
        ),
        grid_spec=pltpu.PrefetchScalarGridSpec(
            num_scalar_prefetch=0,
            grid=(NUM_CORES, per_core),
            in_specs=[
                pl.BlockSpec((block_rows, LANES), in_map),
                pl.BlockSpec((block_rows, LANES), in_map),
            ],
            out_specs=[
                pl.BlockSpec((1, 1, LANES), lambda c, i: (c, 0, 0)),
                pl.BlockSpec((1, 1, LANES), lambda c, i: (c, 0, 0)),
            ],
            scratch_shapes=[
                pltpu.VMEM((block_rows, LANES), jnp.float32),
                pltpu.VMEM((block_rows, LANES), jnp.float32),
            ],
        ),
        compiler_params=pltpu.CompilerParams(
            dimension_semantics=("parallel", "arbitrary"),
        ),
    )(yhat2d, y2d)

    # Combine per-core partials.  NaN if every element is ignored (count == 0),
    # matching PyTorch's mean over an empty selection.
    return jnp.sum(sums[:, 0, 0]) / jnp.sum(cnts[:, 0, 0])


def _reference(y_hat, y):
    """Plain-JAX reference matching the PyTorch module."""
    x = jnp.ravel(y_hat).astype(jnp.float32)
    t = jnp.ravel(y).astype(jnp.float32)
    mask = t > -0.5
    lw = 1.0 + (POS_WEIGHT - 1.0) * t
    sp = jnp.maximum(-x, 0.0) + jnp.log1p(jnp.exp(-jnp.abs(x)))
    loss = jnp.where(mask, (1.0 - t) * x + lw * sp, 0.0)
    return jnp.sum(loss) / jnp.sum(mask.astype(jnp.float32))


if __name__ == "__main__":
    key = jax.random.PRNGKey(0)
    k1, k2, k3 = jax.random.split(key, 3)

    # small shapes consistent with a dense per-pixel prediction task
    shape = (2, 4, 16, 16)
    y_hat = jax.random.normal(k1, shape, dtype=jnp.float32)
    # targets in {0, 1}, with ~20% of positions set to -1 (ignored)
    y_bin = (jax.random.uniform(k2, shape) > 0.5).astype(jnp.float32)
    ignore = jax.random.uniform(k3, shape) < 0.2
    y = jnp.where(ignore, -1.0, y_bin)

    loss = custom_bce_with_logits_loss(y_hat, y)
    jax.block_until_ready(loss)

    ref = _reference(y_hat, y)
    assert jnp.allclose(loss, ref, rtol=1e-4, atol=1e-5), (loss, ref)

    print("KERNEL_OK")
</pallas_src>

<mosaic_0001>
module attributes {stable_mosaic.version = 11 : i64} {
  func.func @kernel(%arg0: i32, %arg1: i32, %arg2: memref<16x128xf32, #tpu.memory_space<vmem>>, %arg3: memref<16x128xf32, #tpu.memory_space<vmem>>, %arg4: memref<1x1x128xf32, #tpu.memory_space<vmem>>, %arg5: memref<1x1x128xf32, #tpu.memory_space<vmem>>, %arg6: memref<16x128xf32, #tpu.memory_space<vmem>>, %arg7: memref<16x128xf32, #tpu.memory_space<vmem>>) attributes {dimension_semantics = [#tpu.dimension_semantics<parallel>, #tpu.dimension_semantics<arbitrary>], iteration_bounds = array<i64: 2, 1>, scalar_prefetch = 0 : i64, scratch_operands = 2 : i64, tpu.core_type = #tpu.core_type<tc>, window_params = [{transform_indices = @transform_0, window_bounds = array<i64: 16, 128>}, {transform_indices = @transform_1, window_bounds = array<i64: 16, 128>}, {transform_indices = @transform_2, window_bounds = array<i64: 1, 1, 128>}, {transform_indices = @transform_3, window_bounds = array<i64: 1, 1, 128>}]} {
    %c0_i32 = arith.constant 0 : i32
    %0 = arith.cmpi eq, %arg1, %c0_i32 : i32
    %1 = arith.extui %0 : i1 to i32
    %c0_i32_0 = arith.constant 0 : i32
    %2 = arith.cmpi ne, %1, %c0_i32_0 : i32
    scf.if %2 {
      %cst_22 = arith.constant 0.000000e+00 : f32
      %52 = vector.broadcast %cst_22 : f32 to vector<16x128xf32>
      %c0_23 = arith.constant 0 : index
      %c0_24 = arith.constant 0 : index
      %53 = vector.load %arg6[%c0_23, %c0_24] : memref<16x128xf32, #tpu.memory_space<vmem>>, vector<16x128xf32>
      tpu.vector_store %arg6[%c0_23, %c0_24], %52 {strides = array<i32>} : memref<16x128xf32, #tpu.memory_space<vmem>>, vector<16x128xf32>,
      %cst_25 = arith.constant 0.000000e+00 : f32
      %54 = vector.broadcast %cst_25 : f32 to vector<16x128xf32>
      %c0_26 = arith.constant 0 : index
      %c0_27 = arith.constant 0 : index
      %55 = vector.load %arg7[%c0_26, %c0_27] : memref<16x128xf32, #tpu.memory_space<vmem>>, vector<16x128xf32>
      tpu.vector_store %arg7[%c0_26, %c0_27], %54 {strides = array<i32>} : memref<16x128xf32, #tpu.memory_space<vmem>>, vector<16x128xf32>,
    } else {
    }
    %c0 = arith.constant 0 : index
    %c0_1 = arith.constant 0 : index
    %3 = vector.load %arg2[%c0, %c0_1] : memref<16x128xf32, #tpu.memory_space<vmem>>, vector<16x128xf32>
    %c0_2 = arith.constant 0 : index
    %c0_3 = arith.constant 0 : index
    %4 = vector.load %arg3[%c0_2, %c0_3] : memref<16x128xf32, #tpu.memory_space<vmem>>, vector<16x128xf32>
    %cst = arith.constant -5.000000e-01 : f32
    %5 = vector.broadcast %cst : f32 to vector<16x128xf32>
    %6 = arith.cmpf ogt, %4, %5 : vector<16x128xf32>
    %c1_i32 = arith.constant 1 : i32
    %7 = arith.muli %arg0, %c1_i32 : i32
    %8 = arith.addi %7, %arg1 : i32
    %c2048_i32 = arith.constant 2048 : i32
    %9 = arith.muli %8, %c2048_i32 : i32
    %10 = tpu.iota {dimensions = array<i32: 0>} : vector<16x128xi32>
    %11 = tpu.iota {dimensions = array<i32: 1>} : vector<16x128xi32>
    %c128_i32 = arith.constant 128 : i32
    %12 = vector.broadcast %c128_i32 : i32 to vector<16x128xi32>
    %13 = arith.muli %10, %12 : vector<16x128xi32>
    %14 = vector.broadcast %9 : i32 to vector<16x128xi32>
    %15 = arith.addi %14, %13 : vector<16x128xi32>
    %16 = arith.addi %15, %11 : vector<16x128xi32>
    %c2048_i32_4 = arith.constant 2048 : i32
    %17 = vector.broadcast %c2048_i32_4 : i32 to vector<16x128xi32>
    %18 = arith.cmpi slt, %16, %17 : vector<16x128xi32>
    %19 = arith.andi %6, %18 : vector<16x128xi1>
    %cst_5 = arith.constant 4.900000e+01 : f32
    %20 = vector.broadcast %cst_5 : f32 to vector<16x128xf32>
    %21 = arith.mulf %20, %4 : vector<16x128xf32>
    %cst_6 = arith.constant 1.000000e+00 : f32
    %22 = vector.broadcast %cst_6 : f32 to vector<16x128xf32>
    %23 = arith.addf %22, %21 : vector<16x128xf32>
    %cst_7 = arith.constant 0.000000e+00 : f32
    %24 = vector.broadcast %cst_7 : f32 to vector<16x128xf32>
    %25 = arith.subf %24, %3 : vector<16x128xf32>
    %cst_8 = arith.constant 0.000000e+00 : f32
    %26 = vector.broadcast %cst_8 : f32 to vector<16x128xf32>
    %27 = arith.maximumf %25, %26 : vector<16x128xf32>
    %28 = math.absf %3 : vector<16x128xf32>
    %cst_9 = arith.constant 0.000000e+00 : f32
    %29 = vector.broadcast %cst_9 : f32 to vector<16x128xf32>
    %30 = arith.subf %29, %28 : vector<16x128xf32>
    %31 = math.exp %30 : vector<16x128xf32>
    %32 = math.log1p %31 : vector<16x128xf32>
    %33 = arith.addf %27, %32 : vector<16x128xf32>
    %cst_10 = arith.constant 1.000000e+00 : f32
    %34 = vector.broadcast %cst_10 : f32 to vector<16x128xf32>
    %35 = arith.subf %34, %4 : vector<16x128xf32>
    %36 = arith.mulf %35, %3 : vector<16x128xf32>
    %37 = arith.mulf %23, %33 : vector<16x128xf32>
    %38 = arith.addf %36, %37 : vector<16x128xf32>
    %c0_11 = arith.constant 0 : index
    %c0_12 = arith.constant 0 : index
    %39 = vector.load %arg6[%c0_11, %c0_12] : memref<16x128xf32, #tpu.memory_space<vmem>>, vector<16x128xf32>
    %cst_13 = arith.constant 0.000000e+00 : f32
    %40 = vector.broadcast %cst_13 : f32 to vector<16x128xf32>
    %41 = arith.select %19, %38, %40 : vector<16x128xi1>, vector<16x128xf32>
    %42 = arith.addf %39, %41 : vector<16x128xf32>
    %c0_14 = arith.constant 0 : index
    %c0_15 = arith.constant 0 : index
    %43 = vector.load %arg6[%c0_14, %c0_15] : memref<16x128xf32, #tpu.memory_space<vmem>>, vector<16x128xf32>
    tpu.vector_store %arg6[%c0_14, %c0_15], %42 {strides = array<i32>} : memref<16x128xf32, #tpu.memory_space<vmem>>, vector<16x128xf32>,
    %c0_16 = arith.constant 0 : index
    %c0_17 = arith.constant 0 : index
    %44 = vector.load %arg7[%c0_16, %c0_17] : memref<16x128xf32, #tpu.memory_space<vmem>>, vector<16x128xf32>
    %45 = arith.extui %19 : vector<16x128xi1> to vector<16x128xi32>
    %46 = arith.sitofp %45 : vector<16x128xi32> to vector<16x128xf32>
    %47 = arith.addf %44, %46 : vector<16x128xf32>
    %c0_18 = arith.constant 0 : index
    %c0_19 = arith.constant 0 : index
    %48 = vector.load %arg7[%c0_18, %c0_19] : memref<16x128xf32, #tpu.memory_space<vmem>>, vector<16x128xf32>
    tpu.vector_store %arg7[%c0_18, %c0_19], %47 {strides = array<i32>} : memref<16x128xf32, #tpu.memory_space<vmem>>, vector<16x128xf32>,
    %c0_i32_20 = arith.constant 0 : i32
    %49 = arith.cmpi eq, %arg1, %c0_i32_20 : i32
    %50 = arith.extui %49 : i1 to i32
    %c0_i32_21 = arith.constant 0 : i32
    %51 = arith.cmpi ne, %50, %c0_i32_21 : i32
    scf.if %51 {
      %c0_22 = arith.constant 0 : index
      %c0_23 = arith.constant 0 : index
      %52 = vector.load %arg6[%c0_22, %c0_23] : memref<16x128xf32, #tpu.memory_space<vmem>>, vector<16x128xf32>
      %53 = vector.shape_cast %52 : vector<16x128xf32> to vector<1x16x128xf32>
      %cst_24 = arith.constant dense<0.000000e+00> : vector<1xf32>
      %54 = vector.multi_reduction <add>, %53, %cst_24 [1, 2] : vector<1x16x128xf32> to vector<1xf32>
      %55 = vector.shape_cast %54 : vector<1xf32> to vector<1x1x1xf32>
      %56 = vector.extract %55[0, 0, 0] : f32 from vector<1x1x1xf32>
      %57 = vector.broadcast %56 : f32 to vector<1x1x128xf32>
      %c0_25 = arith.constant 0 : index
      %c0_26 = arith.constant 0 : index
      %c0_27 = arith.constant 0 : index
      %58 = vector.load %arg4[%c0_25, %c0_26, %c0_27] : memref<1x1x128xf32, #tpu.memory_space<vmem>>, vector<1x1x128xf32>
      tpu.vector_store %arg4[%c0_25, %c0_26, %c0_27], %57 {strides = array<i32>} : memref<1x1x128xf32, #tpu.memory_space<vmem>>, vector<1x1x128xf32>,
      %c0_28 = arith.constant 0 : index
      %c0_29 = arith.constant 0 : index
      %59 = vector.load %arg7[%c0_28, %c0_29] : memref<16x128xf32, #tpu.memory_space<vmem>>, vector<16x128xf32>
      %60 = vector.shape_cast %59 : vector<16x128xf32> to vector<1x16x128xf32>
      %cst_30 = arith.constant dense<0.000000e+00> : vector<1xf32>
      %61 = vector.multi_reduction <add>, %60, %cst_30 [1, 2] : vector<1x16x128xf32> to vector<1xf32>
      %62 = vector.shape_cast %61 : vector<1xf32> to vector<1x1x1xf32>
      %63 = vector.extract %62[0, 0, 0] : f32 from vector<1x1x1xf32>
      %64 = vector.broadcast %63 : f32 to vector<1x1x128xf32>
      %c0_31 = arith.constant 0 : index
      %c0_32 = arith.constant 0 : index
      %c0_33 = arith.constant 0 : index
      %65 = vector.load %arg5[%c0_31, %c0_32, %c0_33] : memref<1x1x128xf32, #tpu.memory_space<vmem>>, vector<1x1x128xf32>
      tpu.vector_store %arg5[%c0_31, %c0_32, %c0_33], %64 {strides = array<i32>} : memref<1x1x128xf32, #tpu.memory_space<vmem>>, vector<1x1x128xf32>,
    } else {
    }
    return
  }
  func.func @transform_0(%arg0: i32, %arg1: i32) -> (i32, i32) {
    %c1_i32 = arith.constant 1 : i32
    %0 = arith.muli %arg0, %c1_i32 : i32
    %1 = arith.addi %0, %arg1 : i32
    %c0_i32 = arith.constant 0 : i32
    %2 = arith.minsi %1, %c0_i32 : i32
    %c0_i32_0 = arith.constant 0 : i32
    %c0_i32_1 = arith.constant 0 : i32
    return %2, %c0_i32_0 : i32, i32
  }
  func.func @transform_1(%arg0: i32, %arg1: i32) -> (i32, i32) {
    %c1_i32 = arith.constant 1 : i32
    %0 = arith.muli %arg0, %c1_i32 : i32
    %1 = arith.addi %0, %arg1 : i32
    %c0_i32 = arith.constant 0 : i32
    %2 = arith.minsi %1, %c0_i32 : i32
    %c0_i32_0 = arith.constant 0 : i32
    %c0_i32_1 = arith.constant 0 : i32
    return %2, %c0_i32_0 : i32, i32
  }
  func.func @transform_2(%arg0: i32, %arg1: i32) -> (i32, i32, i32) {
    %c0_i32 = arith.constant 0 : i32
    %c0_i32_0 = arith.constant 0 : i32
    %c0_i32_1 = arith.constant 0 : i32
    return %arg0, %c0_i32, %c0_i32_0 : i32, i32, i32
  }
  func.func @transform_3(%arg0: i32, %arg1: i32) -> (i32, i32, i32) {
    %c0_i32 = arith.constant 0 : i32
    %c0_i32_0 = arith.constant 0 : i32
    %c0_i32_1 = arith.constant 0 : i32
    return %arg0, %c0_i32, %c0_i32_0 : i32, i32, i32
  }
}

</mosaic_0001>

<bundles_post_ra>
// kernel: tpu_custom_call.1
= control target key start
LH: loop header
LB: loop body
LE: loop exit
PB: predicated region body
PF: predicated region fallthrough
CT: control target
= control target key end

     0   :  { %9 = vsyncpa [#allocation5], 0  ;;  %s1167_s0 = inlined_call_operand.hbm [shape: f32[16,128], index: 0, kind: input, shape index: {}]   ;;  %s1168_s1 = inlined_call_operand.hbm [shape: f32[16,128], index: 1, kind: input, shape index: {}]   ;;  %s1169_s2 = inlined_call_operand.hbm [shape: f32[2,1,128], index: 2, kind: output, shape index: {0}]   ;;  %s1170_s3 = inlined_call_operand.hbm [shape: f32[2,1,128], index: 3, kind: output, shape index: {1}]  }
   0x1   :  { %11 = vsyncpa [#allocation5 + $0x1], 0 }
   0x2   :  { %12 = vsyncpa [#allocation8], 0 }
   0x3   :  { %14 = vsyncpa [#allocation8 + $0x1], 0 }
   0x4   :  { %15 = vsyncpa [#allocation6], 0 }
   0x5   :  { %17 = vsyncpa [#allocation6 + $0x1], 0 }
   0x6   :  { %18 = vsyncpa [#allocation11], 0 }
   0x7   :  { %20 = vsyncpa [#allocation11 + $0x1], 0  ;;  %s917_s12 = smov 0   ;;  %s919_s13 = smov 0  }
   0x8   :  { %s921_s14 = smov 0   ;;  %s923_s15 = smov 0  }
   0x9   :  { %s925_s16 = smov 0   ;;  %s927_s17 = smov 0  }
   0xa   :  { %s929_s18 = smov 0   ;;  %s931_s19 = smov 0  }
   0xb LB: > { %s556_s20 = sadd.s32 4294967295, %s888_s19   ;;  %s557_s21 = sadd.s32 4294967294, %s888_s19   ;;  %s888_s19 = sphi %s931_s19, %s26_s19   ;;  %s884_s18 = sphi %s929_s18, %s1189_s18   ;;  %s880_s17 = sphi %s927_s17, %s1188_s17   ;;  %s876_s16 = sphi %s925_s16, %s1157_s16   ;;  %s872_s15 = sphi %s923_s15, %s1187_s15   ;;  %s868_s14 = sphi %s921_s14, %s1186_s14   ;;  %s864_s13 = sphi %s919_s13, %s1185_s13   ;;  %s860_s12 = sphi %s917_s12, %s1184_s12  }
   0xc   : > { %s38_s22 = sadd.s32 1, %s884_s18  ;;  %p857_p1 = scmp.ne.s32.totalorder %s876_s16, 0 }
   0xd   : > { %p40_p0 = scmp.ge.s32.totalorder %s38_s22, 2  ;;  %p59_p2 = scmp.eq.s32.totalorder %s888_s19, 0 }
   0xe   : > { %p64_p3 = scmp.ne.s32.totalorder %s876_s16, %s872_s15  ;;  %p65_p5 = scmp.eq.s32.totalorder %s556_s20, 0 }
   0xf   : > { %s1191_s22 = smov (%p40_p0, %s38_s22), 0  ;;  %p963_p4 = por %p857_p1, %p59_p2 }
  0x10   : > { %p967_p6 = por %p65_p5, %p64_p3  ;;  %s106_s25 = ssub.s32 %s884_s18, %s1191_s22 }
  0x11   : > { %p107_p7 = scmp.eq.s32.totalorder %s106_s25, 0  ;;  %s109_s26 = sadd.s32 1, %s868_s14 }
  0x12   : > { %s1174_s24 = scalar_select %p967_p6, 1, 0 }
  0x13   : > { %s975_s27 = scalar_select %p107_p7, %s868_s14, %s109_s26  }
  0x14   : > { %p119_p8 = scmp.ne.s32.totalorder %s868_s14, %s864_s13  ;;  %p120_p9 = scmp.eq.s32.totalorder %s556_s20, 1 }
  0x15   : > { %p125_p10 = scmp.ne.s32.totalorder %s864_s13, %s860_s12  ;;  %p126_p11 = scmp.eq.s32.totalorder %s557_s21, 1 }
  0x16   : > { %p981_p12 = por %p120_p9, %p119_p8  ;;  %p604_p1 = scmp.lt.s32.totalorder %s888_s19, 2 }
  0x17   : > { %p986_p0 = por %p126_p11, %p125_p10  ;;  %s890_s30 = smov [#allocation4]  }
  0x18   : > { %s1175_s28 = scalar_select %p981_p12, 1, 0 }
  0x19   : > { %s1176_s29 = scalar_select %p986_p0, 1, 0 }
  0x1a   : > { %s186_s4 = sshll.u32 %s890_s30, 4  ;;  %p993_p2 = pnand %p604_p1, %p963_p4  ;;  %s187_s4 = int_to_ptr.vmem [resolvable:$true] %s186_s4 }
  0x1b   : > { %s689_s8 = scalar_lea.hbm %s1167_s0, 256 }
  0x1c   : > { %p690_p3 = scmp.ne.s32.totalorder %s1167_s0, %s689_s8  ;;  %p691_p5 = pneg %p993_p2 }
  0x1d   : > { %p696_p8 = scmp.lt.u32.totalorder %s689_s8, %s689_s8  ;;  %p698_p9 = scmp.lt.u32.totalorder %s689_s8, %s1167_s0 }
  0x1e   : > { %p692_p7 = pnand %p691_p5, %p690_p3 }
  0x1f   : > { %p699_p10 = por %p698_p9, %p696_p8 }
  0x20   : > { %p693_p4 = pneg %p692_p7 }
  0x22   : > { %p700_p11 = pnand %p699_p10, %p693_p4 }
  0x24   : > { %703 = shalt.err (!%p700_p11)
}
  0x25   : > { %s704_s20 = scalar_lea.vmem %s187_s4, 256  ;;  %s711_s21 = scalar_lea.vmem %s187_s4, 512 }
  0x26   : > { %p705_p1 = scmp.ne.s32.totalorder %s187_s4, %s704_s20  ;;  %p712_p12 = scmp.lt.s32.totalorder %s187_s4, %s187_s4 }
  0x27   : > { %p713_p6 = scmp.lt.s32.totalorder %s711_s21, %s704_s20 }
  0x28   : > { %p707_p13 = pnand %p705_p1, %p691_p5 }
  0x29   : > { %p714_p3 = por %p713_p6, %p712_p12 }
  0x2a   : > { %p708_p0 = pneg %p707_p13 }
  0x2c   : > { %p715_p7 = pnand %p714_p3, %p708_p0 }
  0x2e   : > { %718 = shalt.err (!%p715_p7)
}
  0x2f   : > { %s891_s23 = smov 128   ;;  %s892_s25 = smov 8  }
  0x30   : > { %593 = dma.hbm_to_vmem [thread:$0]  (!%p993_p2), %s1167_s0, 256, %s187_s4, [#allocation5], %s891_s23, %s891_s23, %s892_s25  }
  0x31   : > { %p566_p13 = scmp.ge.s32.totalorder %s888_s19, 1  ;;  %p218_p4 = scmp.lt.s32.totalorder %s888_s19, 3 }
  0x32   : > { %s893_s7 = smov [#allocation7]   ;;  %s719_s11 = scalar_lea.hbm %s1168_s1, 256 }
  0x33   : > { %p1024_p8 = pnand %p566_p13, %p218_p4  ;;  %s210_s8 = sshll.u32 %s893_s7, 4  ;;  %s211_s8 = int_to_ptr.vmem [resolvable:$true] %s210_s8 }
  0x34   : > { %p720_p6 = scmp.ne.s32.totalorder %s1168_s1, %s719_s11  ;;  %p726_p9 = scmp.lt.u32.totalorder %s719_s11, %s719_s11 }
  0x35   : > { %s1178_s6 = scalar_select %p1024_p8, 1, 0 }
  0x36   : > { %p722_p12 = pnand %p720_p6, %p691_p5  ;;  %p728_p10 = scmp.lt.u32.totalorder %s719_s11, %s1168_s1 }
  0x38   : > { %p723_p0 = pneg %p722_p12  ;;  %p729_p11 = por %p728_p10, %p726_p9 }
  0x3a   : > { %p730_p1 = pnand %p729_p11, %p723_p0 }
  0x3c   : > { %733 = shalt.err (!%p730_p1)
}
  0x3d   : > { %s734_s26 = scalar_lea.vmem %s211_s8, 256  ;;  %s741_s30 = scalar_lea.vmem %s211_s8, 512 }
  0x3e   : > { %p735_p3 = scmp.ne.s32.totalorder %s211_s8, %s734_s26  ;;  %p742_p4 = scmp.lt.s32.totalorder %s211_s8, %s211_s8 }
  0x3f   : > { %p743_p8 = scmp.lt.s32.totalorder %s741_s30, %s734_s26 }
  0x40   : > { %p737_p7 = pnand %p735_p3, %p691_p5 }
  0x41   : > { %p744_p6 = por %p743_p8, %p742_p4 }
  0x42   : > { %p738_p13 = pneg %p737_p7 }
  0x44   : > { %p745_p12 = pnand %p744_p6, %p738_p13 }
  0x46   : > { %748 = shalt.err (!%p745_p12)
}
  0x47   : > { %596 = dma.hbm_to_vmem [thread:$0]  (!%p993_p2), %s1168_s1, 256, %s211_s8, [#allocation8], %s891_s23, %s891_s23, %s892_s25  }
  0x48   : > { %p1179_p0 = scmp.ne.s32.totalorder %s1178_s6, 0 }
  0x49   : > { %s224_s10 = sand.u32 (!%p1179_p0), 1, %s876_s16   ;;  %p1180_p5 = scmp.ne.s32.totalorder (!%p1179_p0), %s1174_s24, 0 }
  0x4a   : > { %222 = sbr.rel (%p1179_p0) target bundleno = 371 (0x173), region = 28  ;;  %s567_s11 = sshll.u32 (!%p1179_p0), %s224_s10, 4 }
  0x4b   : > { %s225_s15 = scalar_lea.sflag (!%p1179_p0), [#allocation5], %s224_s10  ;;  %s228_s20 = scalar_lea.vmem (!%p1179_p0), [#allocation4], %s567_s11 }
  0x51   : > { %842 = dma.done.wait (%p1180_p5), %s225_s15, 256  }
  0x52   : > { %844 = vsyncadd (%p1180_p5), %s225_s15, 4294967040  ;;  %s234_s5 = scalar_lea.sflag [#allocation8], %s224_s10  ;;  %s1058_s4 = scalar_lea.vmem [#allocation7], %s567_s11 }
  0x53   : > { %846 = dma.done.wait (%p1180_p5), %s234_s5, 256  }
  0x54   : > { %848 = vsyncadd (%p1180_p5), %s234_s5, 4294967040  ;;  %v284_v0 = vld [vmem:[%s228_s20] sm:$0xff]  ;;  %v285_v1 = vld [vmem:[%s228_s20 + $0x8] sm:$0xff]  ;;  %v292_v8 = vlaneseq  ;;  %s569_s24 = sshll.u32 %s880_s17, 11  ;;  %v894_v59 = vmov 0.0   ;;  %s1068_s23 = sand.u32 1, %s864_s13  }
  0x55   : > { %v316_v2 = vand.u32 2147483647, %v284_v0  ;;  %v317_v3 = vand.u32 2147483647, %v285_v1  ;;  %v299_v18 = vstv %s569_s24  ;;  %v286_v20 = vld [vmem:[%s1058_s4] sm:$0xff]  ;;  %v287_v25 = vld [vmem:[%s1058_s4 + $0x8] sm:$0xff] }
  0x56   : > { %v293_v9 = vshrl.u32 %v292_v8, 7  ;;  %v296_v21 = vand.u32 127, %v292_v8  ;;  %v312_v26 = vsub.f32 0.0, %v284_v0  ;;  %v313_v29 = vsub.f32 0.0, %v285_v1  ;;  %s572_s25 = sshll.u32 %s880_s17, 4  ;;  %s261_s6 = scalar_lea.vmem [#allocation9], %s1068_s23 }
  0x57   : > { %v318_v4 = vsub.f32 0.0, %v316_v2  ;;  %v319_v5 = vsub.f32 0.0, %v317_v3  ;;  %v308_v31 = vmul.f32 49.0, %v286_v20  ;;  %v309_v34 = vmul.f32 49.0, %v287_v25  ;;  %s418_s8 = sshll.u32 %s261_s6, 4  ;;  %s267_s21 = scalar_lea.vmem [#allocation10], %s1068_s23  ;;  %s1082_s8 = int_to_ptr.vmem [resolvable:$true] %s418_s8 }
  0x58   : > { %v294_v11 = vadd.s32 8, %v293_v9  ;;  %v297_v15 = vmul.u32 128, %v293_v9  ;;  %v314_v37 = vmax.f32 %v312_v26, 0.0  ;;  %v344_v39 = vsub.f32 1.0, %v286_v20  ;;  %s431_s26 = sshll.u32 %s267_s21, 4  ;;  %s1080_s9 = scalar_lea.hbm %s1169_s2, %s572_s25  ;;  %s1084_s26 = int_to_ptr.vmem [resolvable:$true] %s431_s26 }
  0x59   : > { %v320_v6 = vmul.f32 1.442695, %v318_v4  ;;  %v322_v7 = vmul.f32 1.442695, %v319_v5  ;;  %v315_v41 = vmax.f32 %v313_v29, 0.0  ;;  %v345_v43 = vsub.f32 1.0, %v287_v25 }
  0x5a   : > { %v298_v16 = vmul.u32 128, %v294_v11  ;;  %v300_v22 = vadd.s32 %v299_v18, %v297_v15  ;;  %v310_v44 = vadd.f32 1.0, %v308_v31  ;;  %vm288_vm2 = vcmp.gt.f32.partialorder %v286_v20, -0.5  ;;  %s402_s11 = scalar_lea.sflag [#allocation6], %s1068_s23  ;;  %s749_s15 = scalar_lea.vmem %s1082_s8, 16 }
  0x5b   : > { %681 = vpow2.f32 %v320_v6  ;;  %v311_v46 = vadd.f32 1.0, %v309_v34  ;;  %v346_v50 = vmul.f32 %v344_v39, %v284_v0  ;;  %vm289_vm4 = vcmp.gt.f32.partialorder %v287_v25, -0.5  ;;  %p750_p2 = scmp.ne.s32.totalorder %s1082_s8, %s749_s15  ;;  %p1181_p8 = scmp.ne.s32.totalorder %s1175_s28, 0 }
  0x5c   : > { %683 = vpow2.f32 %v322_v7  ;;  %v301_v23 = vadd.s32 %v299_v18, %v298_v16  ;;  %v302_v32 = vadd.s32 %v300_v22, %v296_v21  ;;  %v347_v52 = vmul.f32 %v345_v43, %v285_v1  ;;  %s895_s20 = smov [#allocation9]  }
  0x5d   : > { %p751_p9 = pnand %p750_p2, %p1181_p8  ;;  %s753_s5 = sshll.u32 %s895_s20, 4  ;;  %s754_s5 = int_to_ptr.vmem [resolvable:$false] %s753_s5 }
  0x5e   : > { %v303_v33 = vadd.s32 %v301_v23, %v296_v21  ;;  %vm304_vm3 = vcmp.lt.s32.totalorder %v302_v32, 2048  ;;  %s755_s4 = scalar_lea.vmem %s754_s5, 32  ;;  %p756_p11 = scmp.lt.s32.totalorder %s1082_s8, %s754_s5 }
  0x5f   : > { %vm306_vm6 = vmand %vm288_vm2, %vm304_vm3  ;;  %p752_p10 = pneg %p751_p9  ;;  %p757_p1 = scmp.lt.s32.totalorder %s755_s4, %s749_s15 }
  0x60   : > { %vm305_vm5 = vcmp.lt.s32.totalorder %v303_v33, 2048  ;;  %v570_v60 = vsel %vm306_vm6, 1.0, %v894_v59 }
  0x61   : > { %vm307_vm7 = vmand %vm289_vm4, %vm305_vm5  ;;  %p758_p3 = por %p757_p1, %p756_p11 }
  0x62   : > { %v571_v61 = vsel %vm307_vm7, 1.0, %v894_v59 }
  0x63   : > { %v389_v63 = vadd.f32 %v571_v61, %v570_v60  ;;  %p759_p7 = pnand %p758_p3, %p752_p10 }
  0x65   : > { %v682_v10 = vpop.eup %681 }
  0x66   : > { %v684_v12 = vpop.eup %683  ;;  %v324_v13 = vadd.f32 1.0, %v682_v10  ;;  %v327_v17 = vmul.f32 -0.5, %v682_v10  ;;  %v330_v27 = vand.u32 2147483647, %v682_v10 }
  0x67   : > { %v333_v14 = vadd.f32 1.0, %v684_v12  ;;  %v336_v19 = vmul.f32 -0.5, %v684_v12  ;;  %v339_v30 = vand.u32 2147483647, %v684_v12 }
  0x68   : > { %685 = vlog2.f32 %v324_v13  ;;  %v328_v24 = vadd.f32 1.0, %v327_v17  ;;  %vm331_vm0 = vcmp.lt.f32.partialorder %v330_v27, 0.0004427343 }
  0x69   : > { %687 = vlog2.f32 %v333_v14  ;;  %v337_v28 = vadd.f32 1.0, %v336_v19  ;;  %vm340_vm1 = vcmp.lt.f32.partialorder %v339_v30, 0.0004427343 }
  0x6a   : > { %v329_v35 = vmul.f32 %v682_v10, %v328_v24 }
  0x6b   : > { %v338_v38 = vmul.f32 %v684_v12, %v337_v28 }
  0x72   : > { %v686_v36 = vpop.eup %685 }
  0x73   : > { %v688_v40 = vpop.eup %687  ;;  %v326_v42 = vmul.f32 0.6931472, %v686_v36 }
  0x74   : > { %v335_v45 = vmul.f32 0.6931472, %v688_v40 }
  0x75   : > { %v332_v47 = vsel %vm331_vm0, %v329_v35, %v326_v42 }
  0x76   : > { %v341_v48 = vsel %vm340_vm1, %v338_v38, %v335_v45  ;;  %v342_v49 = vadd.f32 %v332_v47, %v314_v37 }
  0x77   : > { %v343_v51 = vadd.f32 %v341_v48, %v315_v41 }
  0x78   : > { %v348_v53 = vmul.f32 %v342_v49, %v310_v44 }
  0x79   : > { %v349_v54 = vmul.f32 %v343_v51, %v311_v46 }
  0x7a   : > { %v350_v55 = vadd.f32 %v348_v53, %v346_v50 }
  0x7b   : > { %v351_v56 = vadd.f32 %v349_v54, %v347_v52 }
  0x7c   : > { %v354_v57 = vsel %vm306_vm6, %v350_v55, 0.0 }
  0x7d   : > { %v355_v58 = vsel %vm307_vm7, %v351_v56, 0.0 }
  0x7e   : > { %v375_v62 = vadd.f32 %v355_v58, %v354_v57 }
  0x80   : > { %376 = vadd.xlane.f32.xlu0 %v375_v62 }
  0x84   : > { %390 = vadd.xlane.f32.xlu0 %v389_v63 }
 0x10d   : > { %v377_v0 = vpop.xlane.xlu0 %376 }
 0x10e   : > { %v378_v2 = vrot.slane %v377_v0, 4 }
 0x110   : > { %v379_v1 = vadd.f32 %v378_v2, %v377_v0 }
 0x111   : > { %v391_v3 = vpop.xlane.xlu0 %390 }
 0x112   : > { %v380_v4 = vrot.slane %v379_v1, 2  ;;  %v392_v5 = vrot.slane %v391_v3, 4 }
 0x114   : > { %v393_v6 = vadd.f32 %v392_v5, %v391_v3  ;;  %v381_v7 = vadd.f32 %v380_v4, %v379_v1 }
 0x116   : > { %v394_v8 = vrot.slane %v393_v6, 2  ;;  %v382_v9 = vrot.slane %v381_v7, 1 }
 0x118   : > { %v395_v10 = vadd.f32 %v394_v8, %v393_v6  ;;  %v383_v11 = vadd.f32 %v382_v9, %v381_v7 }
 0x11a   : > { %578 = vpush %v383_v11  ;;  %v396_v12 = vrot.slane %v395_v10, 1 }
 0x11c   : > { %v397_v13 = vadd.f32 %v396_v12, %v395_v10 }
 0x11e   : > { %580 = vpush %v397_v13 }
 0x14b   : > { %s579_s10 = spop %578 }
 0x14c   : > { %v385_v14 = vstv %s579_s10 }
 0x14d   : > { %386 = vst [vmem:[%s261_s6] sm:$0x1] %v385_v14 }
 0x14e   : > { %762 = shalt.err (!%p759_p7)
}
 0x14f   : > { %s763_s24 = scalar_lea.hbm %s1080_s9, 16  ;;  %s767_s7 = scalar_lea.hbm %s1169_s2, 32 }
 0x150   : > { %p764_p13 = scmp.ne.s32.totalorder %s1080_s9, %s763_s24  ;;  %p768_p12 = scmp.lt.u32.totalorder %s1080_s9, %s1169_s2 }
 0x151   : > { %p769_p0 = scmp.lt.u32.totalorder %s767_s7, %s763_s24  ;;  %p771_p2 = scmp.lt.u32.totalorder %s763_s24, %s1080_s9 }
 0x152   : > { %p765_p4 = pnand %p764_p13, %p1181_p8 }
 0x153   : > { %p770_p5 = por %p769_p0, %p768_p12 }
 0x154   : > { %p766_p6 = pneg %p765_p4 }
 0x155   : > { %p772_p9 = por %p771_p2, %p770_p5 }
 0x157   : > { %p773_p10 = pnand %p772_p9, %p766_p6 }
 0x159   : > { %776 = shalt.err (!%p773_p10)
}
 0x15a   : > { %586 = dma.vmem_to_hbm [thread:$0]  (%p1181_p8), %s1082_s8, 16, %s1080_s9, %s402_s11  }
 0x15b   : > { %s581_s15 = spop %580  ;;  %s1113_s24 = scalar_lea.hbm %s1170_s3, %s572_s25 }
 0x15c   : > { %v399_v15 = vstv %s581_s15  ;;  %s406_s6 = scalar_lea.sflag [#allocation11], %s1068_s23  ;;  %s777_s30 = scalar_lea.vmem %s1084_s26, 16 }
 0x15d   : > { %400 = vst [vmem:[%s267_s21] sm:$0x1] %v399_v15  ;;  %p778_p11 = scmp.ne.s32.totalorder %s1084_s26, %s777_s30  ;;  %s896_s7 = smov [#allocation10]  }
 0x15e   : > { %s781_s10 = sshll.u32 %s896_s7, 4  ;;  %s782_s10 = int_to_ptr.vmem [resolvable:$false] %s781_s10 }
 0x15f   : > { %p779_p1 = pnand %p778_p11, %p1181_p8  ;;  %s783_s8 = scalar_lea.vmem %s782_s10, 32 }
 0x160   : > { %p784_p7 = scmp.lt.s32.totalorder %s1084_s26, %s782_s10  ;;  %p785_p13 = scmp.lt.s32.totalorder %s783_s8, %s777_s30 }
 0x161   : > { %p780_p3 = pneg %p779_p1 }
 0x162   : > { %p786_p4 = por %p785_p13, %p784_p7 }
 0x164   : > { %p787_p6 = pnand %p786_p4, %p780_p3 }
 0x166   : > { %790 = shalt.err (!%p787_p6)
}
 0x167   : > { %s791_s17 = scalar_lea.hbm %s1113_s24, 16  ;;  %s795_s21 = scalar_lea.hbm %s1170_s3, 32 }
 0x168   : > { %p792_p12 = scmp.ne.s32.totalorder %s1113_s24, %s791_s17  ;;  %p796_p2 = scmp.lt.u32.totalorder %s1113_s24, %s1170_s3 }
 0x169   : > { %p797_p9 = scmp.lt.u32.totalorder %s795_s21, %s791_s17  ;;  %p799_p11 = scmp.lt.u32.totalorder %s791_s17, %s1113_s24 }
 0x16a   : > { %p793_p0 = pnand %p792_p12, %p1181_p8 }
 0x16b   : > { %p798_p10 = por %p797_p9, %p796_p2 }
 0x16c   : > { %p794_p5 = pneg %p793_p0 }
 0x16d   : > { %p800_p1 = por %p799_p11, %p798_p10 }
 0x16f   : > { %p801_p3 = pnand %p800_p1, %p794_p5 }
 0x171   : > { %804 = shalt.err (!%p801_p3)
}
 0x172   : > { %587 = dma.vmem_to_hbm [thread:$0]  (%p1181_p8), %s1084_s26, 16, %s1113_s24, %s406_s6  }
 0x173 PF: > { %s443_s20 = sand.u32 1, %s860_s12   ;;  %p1182_p7 = scmp.ne.s32.totalorder %s1176_s29, 0 }
 0x174   : > { %p1183_p13 = scmp.ge.s32.totalorder %s888_s19, 2  ;;  %s444_s15 = scalar_lea.sflag [#allocation6], %s443_s20 }
 0x176   : > { %p598_p4 = pnand %p1183_p13, %p1182_p7 }
 0x178   : > { %850 = dma.done.wait (!%p598_p4), %s444_s15, 16  }
 0x179   : > { %852 = vsyncadd (!%p598_p4), %s444_s15, 4294967280  ;;  %s452_s5 = scalar_lea.sflag [#allocation11], %s443_s20 }
 0x17a   : > { %854 = dma.done.wait (!%p598_p4), %s452_s5, 16  }
 0x17b   : > { %856 = vsyncadd (!%p598_p4), %s452_s5, 4294967280  ;;  %s26_s19 = sadd.s32 1, %s888_s19   ;;  %s1184_s12 = smov %s864_s13 }
 0x17c   : > { %p23_p6 = scmp.ge.s32.totalorder %s26_s19, 4   ;;  %s1185_s13 = smov %s868_s14 }
 0x17d   : > { %s1186_s14 = smov %s975_s27  ;;  %s1187_s15 = smov %s876_s16 }
 0x17e   : > { %s1157_s16 = smov 0   ;;  %s1188_s17 = smov %s884_s18 }
 0x17f   : > { %s1189_s18 = smov %s1191_s22  ;;  %25 = sbr.rel (!%p23_p6) target bundleno = 11 (0xb), region = 111 }
 0x186   :  { %456 = vsyncpa [#allocation5], 1 }
 0x187   :  { %458 = vsyncpa [#allocation5 + $0x1], 1 }
 0x188   :  { %459 = vsyncpa [#allocation8], 1 }
 0x189   :  { %461 = vsyncpa [#allocation8 + $0x1], 1 }
 0x18a   :  { %462 = vsyncpa [#allocation6], 1 }
 0x18b   :  { %464 = vsyncpa [#allocation6 + $0x1], 1 }
 0x18c   :  { %465 = vsyncpa [#allocation11], 1 }
 0x18d   :  { %467 = vsyncpa [#allocation11 + $0x1], 1 }

</bundles_post_ra>
